<compile_context>
chip_gen: v7x
topology: tpu7x:2x2x1
jax: 0.10.0
libtpu: 0.0.40
codegen_flags: <defaults>
</compile_context>

<pallas_src>
import jax
import jax.numpy as jnp
from jax import lax
from jax.experimental import pallas as pl
from jax.experimental.pallas import tpu as pltpu


def _decoder_kernel(xf_ref, w_ref, b_ref, r_ref, out_ref):
    # Block shapes:
    #   xf_ref : (S, D)   S = G * N_pad node rows of this chunk
    #   w_ref  : (D, D)   torch Linear weight (out, in)
    #   b_ref  : (1, D)
    #   r_ref  : (D, D)   bilinear relation
    #   out_ref: (S, S)   dense hr @ h^T block (lane-dense when S % 128 == 0)
    xf = xf_ref[...]

    # FFN: h = ReLU(x @ W^T + b).  Contract last dims of both operands so the
    # MXU consumes W in transposed-operand form (no in-kernel transpose).
    h = lax.dot_general(xf, w_ref[...], (((1,), (1,)), ((), ())),
                        preferred_element_type=jnp.float32) + b_ref[...]
    h = jnp.maximum(h, 0.0)                                     # (S, D)

    # hr = h @ relation   (dense S-row MXU matmul)
    hr = lax.dot_general(h, r_ref[...], (((1,), (0,)), ((), ())),
                         preferred_element_type=jnp.float32)    # (S, D)

    # Dense bilinear block: out = hr @ h^T (contract feature dims; h^T never
    # materialized).  The per-graph results are the diagonal (N_pad, N_pad)
    # sub-blocks, extracted in the wrapper.
    out_ref[...] = lax.dot_general(hr, h, (((1,), (1,)), ((), ())),
                                   preferred_element_type=jnp.float32)


def prepare_params(w_ffn, b_ffn, relation):
    """One-time parameter preparation (hoisted out of the per-call path)."""
    return (w_ffn.astype(jnp.float32),
            b_ffn.reshape(1, -1).astype(jnp.float32),
            relation.astype(jnp.float32))


def nn_bilinear_decoder_batched(x, w_ffn, b_ffn_2d, relation, *,
                                max_block_rows=256):
    """x: (B, N, D) batch of node-feature matrices -> (B, N, N) scores."""
    B, N, D = x.shape

    # Pad node rows per graph to a multiple of 8 so every chunked block is
    # (8, .)-aligned and the flat reshape stays a free sublane split.
    n_pad = ((N + 7) // 8) * 8

    # Graphs per chunk: dense bilinear block is (G*n_pad, G*n_pad); cap its
    # rows at ~max_block_rows (waste from off-diagonal blocks stays small) and
    # keep >= 2 chunks when B allows it so both v7x TensorCores get work.
    G = max(1, max_block_rows // n_pad)
    if B >= 2:
        G = min(G, (B + 1) // 2)
    G = min(G, B)
    S = G * n_pad

    num_chunks = pl.cdiv(B, G)
    if num_chunks > 1 and num_chunks % 2 == 1:
        num_chunks += 1                       # even chunk count for v7x megacore
    Bp = num_chunks * G

    xp = x.astype(jnp.float32)
    if n_pad != N or Bp != B:
        xp = jnp.pad(xp, ((0, Bp - B), (0, n_pad - N), (0, 0)))
    xf = xp.reshape(Bp * n_pad, D)            # flat row-stacked layout

    flops = num_chunks * (4 * S * D * D + 2 * S * S * D)
    bytes_accessed = 4 * (Bp * n_pad * D + 2 * D * D + D + num_chunks * S * S)

    dense = pl.pallas_call(
        _decoder_kernel,
        out_shape=jax.ShapeDtypeStruct((num_chunks * S, S), jnp.float32),
        grid=(num_chunks,),
        in_specs=[
            pl.BlockSpec((S, D), lambda c: (c, 0)),    # streamed node rows
            pl.BlockSpec((D, D), lambda c: (0, 0)),    # W_ffn (resident)
            pl.BlockSpec((1, D), lambda c: (0, 0)),    # b_ffn (resident)
            pl.BlockSpec((D, D), lambda c: (0, 0)),    # relation (resident)
        ],
        out_specs=pl.BlockSpec((S, S), lambda c: (c, 0)),   # lane-dense block
        compiler_params=pltpu.CompilerParams(
            dimension_semantics=("parallel",)),              # 2 TCs on v7x
        cost_estimate=pl.CostEstimate(
            flops=flops, transcendentals=0, bytes_accessed=bytes_accessed),
    )(xf, w_ffn, b_ffn_2d, relation)

    # Extract the per-graph diagonal (n_pad, n_pad) blocks outside the kernel
    # (cheap XLA slice/diagonal, keeps the kernel's stores lane-dense).
    d5 = dense.reshape(num_chunks, G, n_pad, G, n_pad)
    diag = jnp.diagonal(d5, axis1=1, axis2=3)          # (C, n_pad, n_pad, G)
    out = jnp.moveaxis(diag, -1, 1).reshape(Bp, n_pad, n_pad)
    return out[:B, :N, :N]


def nn_bilinear_decoder(x, w_ffn, b_ffn_2d, relation):
    """Single-graph forward, matching the PyTorch module: (N, D) -> (N, N)."""
    return nn_bilinear_decoder_batched(x[None], w_ffn, b_ffn_2d, relation)[0]


def _xavier_normal(key, shape):
    fan_in, fan_out = shape[1], shape[0]
    std = (2.0 / (fan_in + fan_out)) ** 0.5
    return std * jax.random.normal(key, shape, dtype=jnp.float32)


if __name__ == "__main__":
    N, D, B = 16, 32, 16  # 16 nodes, input_dim=32, 16 decoder evaluations

    key = jax.random.PRNGKey(0)
    k_x, k_rel, k_w = jax.random.split(key, 3)

    # Deterministic parameter init mirroring reset_parameter():
    #   2-D params -> xavier_normal, 1-D params -> 0
    relation = _xavier_normal(k_rel, (D, D))
    w_ffn = _xavier_normal(k_w, (D, D))        # torch Linear weight (out, in)
    b_ffn = jnp.zeros((D,), dtype=jnp.float32)
    w_ffn, b2d, relation = prepare_params(w_ffn, b_ffn, relation)

    x_batch = jax.random.normal(k_x, (B, N, D), dtype=jnp.float32)

    out_b = jax.block_until_ready(
        nn_bilinear_decoder_batched(x_batch, w_ffn, b2d, relation))
    out_1 = jax.block_until_ready(
        nn_bilinear_decoder(x_batch[0], w_ffn, b2d, relation))

    # Pure-JAX reference for correctness.
    h_ref = jnp.maximum(jnp.einsum('bni,oi->bno', x_batch, w_ffn) + b_ffn, 0.0)
    ref = jnp.einsum('bie,bje->bij',
                     jnp.einsum('bid,de->bie', h_ref, relation), h_ref)

    assert out_b.shape == (B, N, N)
    assert jnp.allclose(out_b, ref, atol=1e-3, rtol=1e-3)
    assert jnp.allclose(out_1, ref[0], atol=1e-3, rtol=1e-3)

    print("KERNEL_OK")
</pallas_src>

<mosaic_0001>
module attributes {stable_mosaic.version = 11 : i64} {
  func.func @_decoder_kernel(%arg0: i32, %arg1: memref<128x32xf32, #tpu.memory_space<vmem>>, %arg2: memref<32x32xf32, #tpu.memory_space<vmem>>, %arg3: memref<1x32xf32, #tpu.memory_space<vmem>>, %arg4: memref<32x32xf32, #tpu.memory_space<vmem>>, %arg5: memref<128x128xf32, #tpu.memory_space<vmem>>) attributes {dimension_semantics = [#tpu.dimension_semantics<parallel>], iteration_bounds = array<i64: 2>, scalar_prefetch = 0 : i64, scratch_operands = 0 : i64, tpu.core_type = #tpu.core_type<tc>, window_params = [{transform_indices = @transform_0, window_bounds = array<i64: 128, 32>}, {pipeline_mode = #tpu.pipeline_mode<synchronous>, transform_indices = @transform_1, window_bounds = array<i64: 32, 32>}, {pipeline_mode = #tpu.pipeline_mode<synchronous>, transform_indices = @transform_2, window_bounds = array<i64: 1, 32>}, {pipeline_mode = #tpu.pipeline_mode<synchronous>, transform_indices = @transform_3, window_bounds = array<i64: 32, 32>}, {transform_indices = @transform_4, window_bounds = array<i64: 128, 128>}]} {
    %c0 = arith.constant 0 : index
    %c0_0 = arith.constant 0 : index
    %0 = vector.load %arg1[%c0, %c0_0] : memref<128x32xf32, #tpu.memory_space<vmem>>, vector<128x32xf32>
    %c0_1 = arith.constant 0 : index
    %c0_2 = arith.constant 0 : index
    %1 = vector.load %arg2[%c0_1, %c0_2] : memref<32x32xf32, #tpu.memory_space<vmem>>, vector<32x32xf32>
    %cst = arith.constant dense<0.000000e+00> : vector<128x32xf32>
    %2 = tpu.matmul %0, %1, %cst {dimension_numbers = #tpu.dot_dimension_numbers<[1], [1], [0], [0], [0, 0, 1, 0], [], []>} : vector<128x32xf32>, vector<32x32xf32>, vector<128x32xf32> -> vector<128x32xf32>
    %c0_3 = arith.constant 0 : index
    %c0_4 = arith.constant 0 : index
    %3 = vector.load %arg3[%c0_3, %c0_4] : memref<1x32xf32, #tpu.memory_space<vmem>>, vector<1x32xf32>
    %4 = vector.broadcast %3 : vector<1x32xf32> to vector<128x32xf32>
    %5 = arith.addf %2, %4 : vector<128x32xf32>
    %cst_5 = arith.constant 0.000000e+00 : f32
    %6 = vector.broadcast %cst_5 : f32 to vector<128x32xf32>
    %7 = arith.maximumf %5, %6 : vector<128x32xf32>
    %c0_6 = arith.constant 0 : index
    %c0_7 = arith.constant 0 : index
    %8 = vector.load %arg4[%c0_6, %c0_7] : memref<32x32xf32, #tpu.memory_space<vmem>>, vector<32x32xf32>
    %cst_8 = arith.constant dense<0.000000e+00> : vector<128x32xf32>
    %9 = tpu.matmul %7, %8, %cst_8 {dimension_numbers = #tpu.dot_dimension_numbers<[1], [0], [0], [1], [0, 0, 1, 1], [], []>} : vector<128x32xf32>, vector<32x32xf32>, vector<128x32xf32> -> vector<128x32xf32>
    %cst_9 = arith.constant dense<0.000000e+00> : vector<128x128xf32>
    %10 = tpu.matmul %9, %7, %cst_9 {dimension_numbers = #tpu.dot_dimension_numbers<[1], [1], [0], [0], [0, 0, 1, 0], [], []>} : vector<128x32xf32>, vector<128x32xf32>, vector<128x128xf32> -> vector<128x128xf32>
    %c0_10 = arith.constant 0 : index
    %c0_11 = arith.constant 0 : index
    %11 = vector.load %arg5[%c0_10, %c0_11] : memref<128x128xf32, #tpu.memory_space<vmem>>, vector<128x128xf32>
    tpu.vector_store %arg5[%c0_10, %c0_11], %10 {strides = array<i32>} : memref<128x128xf32, #tpu.memory_space<vmem>>, vector<128x128xf32>,
    return
  }
  func.func @transform_0(%arg0: i32) -> (i32, i32) {
    %c0_i32 = arith.constant 0 : i32
    %c0_i32_0 = arith.constant 0 : i32
    return %arg0, %c0_i32 : i32, i32
  }
  func.func @transform_1(%arg0: i32) -> (i32, i32) {
    %c0_i32 = arith.constant 0 : i32
    %c0_i32_0 = arith.constant 0 : i32
    %c0_i32_1 = arith.constant 0 : i32
    return %c0_i32, %c0_i32_0 : i32, i32
  }
  func.func @transform_2(%arg0: i32) -> (i32, i32) {
    %c0_i32 = arith.constant 0 : i32
    %c0_i32_0 = arith.constant 0 : i32
    %c0_i32_1 = arith.constant 0 : i32
    return %c0_i32, %c0_i32_0 : i32, i32
  }
  func.func @transform_3(%arg0: i32) -> (i32, i32) {
    %c0_i32 = arith.constant 0 : i32
    %c0_i32_0 = arith.constant 0 : i32
    %c0_i32_1 = arith.constant 0 : i32
    return %c0_i32, %c0_i32_0 : i32, i32
  }
  func.func @transform_4(%arg0: i32) -> (i32, i32) {
    %c0_i32 = arith.constant 0 : i32
    %c0_i32_0 = arith.constant 0 : i32
    return %arg0, %c0_i32 : i32, i32
  }
}

</mosaic_0001>

<bundles_post_ra>
// kernel: tpu_custom_call.1
= control target key start
LH: loop header
LB: loop body
LE: loop exit
PB: predicated region body
PF: predicated region fallthrough
CT: control target
= control target key end

     0   :  { %9 = vsyncpa [#allocation3], 0  ;;  %s1735_s0 = inlined_call_operand.vmem [shape: f32[256,32], index: 0, kind: input, shape index: {}]   ;;  %s1736_s1 = inlined_call_operand.vmem [shape: f32[32,32], index: 1, kind: input, shape index: {}]   ;;  %s1737_s2 = inlined_call_operand.vmem [shape: f32[1,32], index: 2, kind: input, shape index: {}]   ;;  %s1738_s3 = inlined_call_operand.vmem [shape: f32[32,32], index: 3, kind: input, shape index: {}]   ;;  %s1739_s4 = inlined_call_operand.hbm [shape: f32[256,128], index: 4, kind: output, shape index: {}]  }
   0x1   :  { %11 = vsyncpa [#allocation3 + $0x1], 0  ;;  %s1421_s15 = smov 0   ;;  %s1423_s16 = smov 0  }
   0x2   :  { %s1425_s17 = smov 0   ;;  %s1427_s18 = smov 0  }
   0x3 LB: > { %s1442_s19 = sadd.s32 4294967295, %s1391_s18   ;;  %s930_s20 = sadd.s32 4294967294, %s1391_s18   ;;  %s1391_s18 = sphi %s1427_s18, %s1747_s18   ;;  %s1387_s17 = sphi %s1425_s17, %s1746_s17   ;;  %s1383_s16 = sphi %s1423_s16, %s1745_s16   ;;  %s1379_s15 = sphi %s1421_s15, %s1744_s15  }
   0x4   : > { %s1446_s21 = sadd.s32 1, %s1391_s18   ;;  %s113_s22 = sadd.s32 1, %s1387_s17 }
   0x5   : > { %s110_s23 = ssub.s32 %s1391_s18, %s1446_s21  ;;  %p123_p0 = scmp.ne.s32.totalorder %s1387_s17, %s1383_s16 }
   0x6   : > { %p111_p1 = scmp.eq.s32.totalorder %s110_s23, 0  ;;  %p124_p2 = scmp.eq.s32.totalorder %s1442_s19, 1 }
   0x7   : > { %p129_p3 = scmp.ne.s32.totalorder %s1383_s16, %s1379_s15  ;;  %p130_p4 = scmp.eq.s32.totalorder %s930_s20, 1 }
   0x8   : > { %s1457_s24 = scalar_select %p111_p1, %s1387_s17, %s113_s22  }
   0x9   : > { %p1459_p5 = por %p124_p2, %p123_p0  ;;  %p1463_p6 = por %p130_p4, %p129_p3 }
   0xa   : > { %p933_p7 = scmp.ge.s32.totalorder %s1391_s18, 1  ;;  %p166_p8 = scmp.lt.s32.totalorder %s1391_s18, 3 }
   0xc   : > { %p167_p9 = pnand %p933_p7, %p166_p8 }
   0xd   : > { %v215_v0 = vld [vmem:[%s1736_s1] sm:$0xff] (!%p167_p9)  ;;  %v216_v1 = vld [vmem:[%s1736_s1 + $0x8] sm:$0xff] (!%p167_p9)  ;;  %vm226_vm0 = vcmask (!%p167_p9), 261120   ;;  %v217_v2 = vld [vmem:[%s1736_s1 + $0x10] sm:$0xff] (!%p167_p9)  ;;  %s935_s7 = sshll.u32 (!%p167_p9), %s1442_s19, 4  ;;  %s1011_s10 = sshll.u32 (!%p167_p9), %s1442_s19, 11 }
   0xe   : > { %170 = sbr.rel (%p167_p9) target bundleno = 720 (0x2d0), region = 36  ;;  %v1204_v3 = vpack.c.bf16 (!%p167_p9), %v216_v1, %v215_v0  ;;  %vm1481_vm1 = vmpackc.low (!%p167_p9), %vm226_vm0, %vm226_vm0  ;;  %v218_v5 = vld [vmem:[%s1736_s1 + $0x18] sm:$0xff] (!%p167_p9)  ;;  %p193_p10 = scmp.lt.s32.totalorder (!%p167_p9), %s935_s7, 31  ;;  %v448_v6 = vld [vmem:[%s1738_s3] sm:$0xff] (!%p167_p9) }
   0xf   : > { %v1210_v7 = vpack.c.bf16 (!%p167_p9), %v218_v5, %v217_v2  ;;  %v449_v8 = vld [vmem:[%s1738_s3 + $0x8] sm:$0xff] (!%p167_p9)  ;;  %v450_v9 = vld [vmem:[%s1738_s3 + $0x10] sm:$0xff] (!%p167_p9)  ;;  %v451_v10 = vld [vmem:[%s1738_s3 + $0x18] sm:$0xff] (!%p167_p9)  ;;  %s1686_s14 = scalar_lea.hbm (!%p167_p9), %s1739_s4, %s1011_s10  ;;  %s1393_s22 = smov (!%p167_p9), [#allocation2]  }
  0x10   : > { %1206 = vmatprep.subr.msk.bf16.mxu0 (!%p167_p9), %vm1481_vm1, %v1204_v3  ;;  %v1216_v11 = vpack.c.bf16 (!%p167_p9), %v449_v8, %v448_v6  ;;  %v1220_v12 = vpack.c.bf16 (!%p167_p9), %v451_v10, %v450_v9  ;;  %v1548_v29 = vld [vmem:[%s1737_s2] ss:$0 sm:$0xff] (!%p167_p9)  ;;  %s1333_s23 = sshll.u32 (!%p167_p9), %s1393_s22, 4  ;;  %s1334_s23 = int_to_ptr.vmem [resolvable:$false] %s1333_s23 }
  0x11   : > { %1209 = vmatpush3.bf16.xpose.msk.msra.mxu0 (!%p167_p9), %vm1481_vm1, %v1204_v3 }
  0x12   : > { %1212 = vmatprep.subr.msk.bf16.mxu0 (!%p167_p9), %vm1481_vm1, %v1210_v7  ;;  %1217 = vmatprep.subr.bf16.mxu1 (!%p167_p9), %v1216_v11 }
  0x13   : > { %1219 = vmatpush3.bf16.msra.mxu1 (!%p167_p9), %v1216_v11 }
  0x14   : > { %1221 = vmatprep.subr.bf16.mxu1 (!%p167_p9), %v1220_v12 }
  0x15   : > { %s1749_s7 = smov (!%p193_p10, %s935_s7), 31 }
  0x16   : > { %s936_s27 = sshll.u32 %s1749_s7, 3  ;;  %s189_s7 = sand.u32 1, %s1383_s16  }
  0x17   : > { %s1509_s30 = scalar_lea.vmem %s1735_s0, %s936_s27  ;;  %1223 = vmatpush3.bf16.msra.mxu1 %v1220_v12  ;;  %s934_s8 = sshll.u32 %s189_s7, 7 }
  0x18   : > { %v199_v13 = vld [vmem:[%s1509_s30] sm:$0xff]  ;;  %v200_v14 = vld [vmem:[%s1509_s30 + $0x8] sm:$0xff]  ;;  %v201_v15 = vld [vmem:[%s1509_s30 + $0x10] sm:$0xff]  ;;  %s1665_s9 = scalar_lea.vmem [#allocation2], %s934_s8  ;;  %s1694_s19 = scalar_lea.sflag [#allocation3], %s189_s7 }
  0x19   : > { %1092 = vmatprep.mubr.msk.f32.mxu0 %vm226_vm0, %v199_v13  ;;  %1215 = vmatpush3.bf16.xpose.msk.msra.mxu0 %vm1481_vm1, %v1210_v7  ;;  %v202_v16 = vld [vmem:[%s1509_s30 + $0x18] sm:$0xff]  ;;  %v203_v17 = vld [vmem:[%s1509_s30 + $0x20] sm:$0xff]  ;;  %v204_v18 = vld [vmem:[%s1509_s30 + $0x28] sm:$0xff]  ;;  %s868_s11 = sshll.u32 %s1665_s9, 4  ;;  %s1335_s27 = scalar_lea.vmem %s1334_s23, 4096  ;;  %s1688_s11 = int_to_ptr.vmem [resolvable:$true] %s868_s11 }
  0x1a   : > { %v205_v19 = vld [vmem:[%s1509_s30 + $0x30] sm:$0xff]  ;;  %v206_v20 = vld [vmem:[%s1509_s30 + $0x38] sm:$0xff]  ;;  %v207_v21 = vld [vmem:[%s1509_s30 + $0x40] sm:$0xff]  ;;  %s1329_s20 = scalar_lea.vmem %s1688_s11, 2048  ;;  %p1336_p0 = scmp.lt.s32.totalorder %s1688_s11, %s1334_s23 }
  0x1b   : > { %v208_v22 = vld [vmem:[%s1509_s30 + $0x48] sm:$0xff]  ;;  %v209_v23 = vld [vmem:[%s1509_s30 + $0x50] sm:$0xff]  ;;  %v210_v24 = vld [vmem:[%s1509_s30 + $0x58] sm:$0xff]  ;;  %p1330_p11 = scmp.ne.s32.totalorder %s1688_s11, %s1329_s20  ;;  %p1337_p1 = scmp.lt.s32.totalorder %s1335_s27, %s1329_s20 }
  0x1c   : > { %v211_v25 = vld [vmem:[%s1509_s30 + $0x60] sm:$0xff]  ;;  %v212_v26 = vld [vmem:[%s1509_s30 + $0x68] sm:$0xff]  ;;  %v213_v27 = vld [vmem:[%s1509_s30 + $0x70] sm:$0xff] }
  0x1d   : > { %v214_v28 = vld [vmem:[%s1509_s30 + $0x78] sm:$0xff]  ;;  %p1331_p12 = pnand %p1330_p11, %p1459_p5  ;;  %p1338_p2 = por %p1337_p1, %p1336_p0 }
  0x1f   : > { %p1332_p13 = pneg %p1331_p12 }
  0x20   : > { %1093 = vmatmul.mubr.msk.f32.vlgmr.msra.gmra.mrb[0].mxu0 %vm226_vm0, %v200_v14 }
  0x21   : > { %1095 = vmatprep.mubr.msk.f32.mxu0 %vm226_vm0, %v201_v15  ;;  %p1339_p3 = pnand %p1338_p2, %p1332_p13 }
  0x24   : > { %1096 = vmatmul.mubr.msk.f32.gmra.mrb[2].mxu0 %vm226_vm0, %v202_v16 }
  0x25   : > { %1098 = vmatprep.mubr.msk.f32.mxu0 %vm226_vm0, %v203_v17 }
  0x28   : > { %1099 = vmatmul.mubr.msk.f32.gmra.mrb[4].mxu0 %vm226_vm0, %v204_v18 }
  0x29   : > { %1101 = vmatprep.mubr.msk.f32.mxu0 %vm226_vm0, %v205_v19 }
  0x2c   : > { %1102 = vmatmul.mubr.msk.f32.gmra.mrb[6].mxu0 %vm226_vm0, %v206_v20 }
  0x2d   : > { %1104 = vmatprep.mubr.msk.f32.mxu0 %vm226_vm0, %v207_v21 }
  0x30   : > { %1105 = vmatmul.mubr.msk.f32.gmra.mrb[8].mxu0 %vm226_vm0, %v208_v22 }
  0x31   : > { %1107 = vmatprep.mubr.msk.f32.mxu0 %vm226_vm0, %v209_v23 }
  0x34   : > { %1108 = vmatmul.mubr.msk.f32.gmra.mrb[10].mxu0 %vm226_vm0, %v210_v24 }
  0x35   : > { %1110 = vmatprep.mubr.msk.f32.mxu0 %vm226_vm0, %v211_v25 }
  0x38   : > { %1111 = vmatmul.mubr.msk.f32.gmra.mrb[12].mxu0 %vm226_vm0, %v212_v26 }
  0x39   : > { %1113 = vmatprep.mubr.msk.f32.mxu0 %vm226_vm0, %v213_v27 }
  0x3c   : > { %1114 = vmatmul.mubr.msk.f32.gmra.mrb[14].mxu0 %vm226_vm0, %v214_v28 }
  0xf3   : > { %v1094_v30 = vpop.f32.mrb[0].mxu0 }
  0xf4   : > { %v359_v31 = vadd.f32 %v1094_v30, %v1548_v29  ;;  %v353_v32 = vpop.f32.mrb[1].mxu0 }
  0xf5   : > { %v354_v33 = vadd.f32 %v1548_v29, %v353_v32 }
  0xf6   : > { %v433_v34 = vmax.f32 %v359_v31, 0.0 }
  0xf7   : > { %v432_v35 = vmax.f32 %v354_v33, 0.0  ;;  %v1097_v36 = vpop.f32.mrb[2].mxu0 }
  0xf8   : > { %v369_v37 = vadd.f32 %v1097_v36, %v1548_v29  ;;  %v363_v38 = vpop.f32.mrb[3].mxu0 }
  0xf9   : > { %v1224_v39 = vpack.c.bf16 %v433_v34, %v432_v35  ;;  %v364_v40 = vadd.f32 %v1548_v29, %v363_v38  ;;  %1124 = vmatprep.mubr.msk.f32.mxu1 %vm226_vm0, %v432_v35 }
  0xfa   : > { %v435_v41 = vmax.f32 %v369_v37, 0.0  ;;  %1125 = vmatmul.mubr.msk.f32.vlgmr.msra.gmra.mrb[0].mxu1 %vm226_vm0, %v433_v34 }
  0xfb   : > { %v434_v42 = vmax.f32 %v364_v40, 0.0  ;;  %v1100_v43 = vpop.f32.mrb[4].mxu0  ;;  %1226 = vmatprep.subr.msk.bf16.mxu0 %vm1481_vm1, %v1224_v39  ;;  %1272 = vmatprep.subr.msk.bf16.mxu1 %vm1481_vm1, %v1224_v39 }
  0xfc   : > { %v379_v44 = vadd.f32 %v1100_v43, %v1548_v29  ;;  %v373_v45 = vpop.f32.mrb[5].mxu0  ;;  %1229 = vmatpush3.bf16.xpose.msk.msra.mxu0 %vm1481_vm1, %v1224_v39  ;;  %1280 = vmatpush3.bf16.xpose.msk.msra.mxu1 %vm1481_vm1, %v1224_v39 }
  0xfd   : > { %v1230_v46 = vpack.c.bf16 %v435_v41, %v434_v42  ;;  %v374_v47 = vadd.f32 %v1548_v29, %v373_v45  ;;  %1127 = vmatprep.mubr.msk.f32.mxu1 %vm226_vm0, %v434_v42 }
  0xfe   : > { %v437_v48 = vmax.f32 %v379_v44, 0.0  ;;  %1128 = vmatmul.mubr.msk.f32.gmra.mrb[2].mxu1 %vm226_vm0, %v435_v41 }
  0xff   : > { %v436_v49 = vmax.f32 %v374_v47, 0.0  ;;  %v1103_v50 = vpop.f32.mrb[6].mxu0  ;;  %1232 = vmatprep.subr.msk.bf16.mxu0 %vm1481_vm1, %v1230_v46  ;;  %1273 = vmatprep.subr.msk.bf16.mxu1 %vm1481_vm1, %v1230_v46 }
 0x100   : > { %v389_v51 = vadd.f32 %v1103_v50, %v1548_v29  ;;  %v383_v52 = vpop.f32.mrb[7].mxu0 }
 0x101   : > { %v1236_v53 = vpack.c.bf16 %v437_v48, %v436_v49  ;;  %v384_v54 = vadd.f32 %v1548_v29, %v383_v52  ;;  %1130 = vmatprep.mubr.msk.f32.mxu1 %vm226_vm0, %v436_v49 }
 0x102   : > { %v439_v55 = vmax.f32 %v389_v51, 0.0  ;;  %1131 = vmatmul.mubr.msk.f32.gmra.mrb[4].mxu1 %vm226_vm0, %v437_v48 }
 0x103   : > { %v438_v56 = vmax.f32 %v384_v54, 0.0  ;;  %v1106_v57 = vpop.f32.mrb[8].mxu0 }
 0x104   : > { %v399_v58 = vadd.f32 %v1106_v57, %v1548_v29  ;;  %v393_v59 = vpop.f32.mrb[9].mxu0  ;;  %1235 = vmatpush3.bf16.xpose.msk.msra.mxu0 %vm1481_vm1, %v1230_v46  ;;  %1281 = vmatpush3.bf16.xpose.msk.msra.mxu1 %vm1481_vm1, %v1230_v46 }
 0x105   : > { %v1242_v60 = vpack.c.bf16 %v439_v55, %v438_v56  ;;  %v394_v61 = vadd.f32 %v1548_v29, %v393_v59  ;;  %1133 = vmatprep.mubr.msk.f32.mxu1 %vm226_vm0, %v438_v56  ;;  %1238 = vmatprep.subr.msk.bf16.mxu0 %vm1481_vm1, %v1236_v53 }
 0x106   : > { %v441_v62 = vmax.f32 %v399_v58, 0.0  ;;  %1274 = vmatprep.subr.msk.bf16.mxu1 %vm1481_vm1, %v1236_v53  ;;  %1134 = vmatmul.mubr.msk.f32.gmra.mrb[6].mxu1 %vm226_vm0, %v439_v55 }
 0x107   : > { %v440_v63 = vmax.f32 %v394_v61, 0.0  ;;  %v1109_v0 = vpop.f32.mrb[10].mxu0 }
 0x108   : > { %v409_v1 = vadd.f32 %v1109_v0, %v1548_v29  ;;  %v403_v2 = vpop.f32.mrb[11].mxu0 }
 0x109   : > { %v1248_v3 = vpack.c.bf16 %v441_v62, %v440_v63  ;;  %v404_v5 = vadd.f32 %v1548_v29, %v403_v2  ;;  %1136 = vmatprep.mubr.msk.f32.mxu1 %vm226_vm0, %v440_v63 }
 0x10a   : > { %v443_v6 = vmax.f32 %v409_v1, 0.0  ;;  %1137 = vmatmul.mubr.msk.f32.gmra.mrb[8].mxu1 %vm226_vm0, %v441_v62 }
 0x10b   : > { %v442_v7 = vmax.f32 %v404_v5, 0.0  ;;  %v1112_v8 = vpop.f32.mrb[12].mxu0 }
 0x10c   : > { %v419_v9 = vadd.f32 %v1112_v8, %v1548_v29  ;;  %v413_v10 = vpop.f32.mrb[13].mxu0  ;;  %1241 = vmatpush3.bf16.xpose.msk.msra.mxu0 %vm1481_vm1, %v1236_v53  ;;  %1282 = vmatpush3.bf16.xpose.msk.msra.mxu1 %vm1481_vm1, %v1236_v53 }
 0x10d   : > { %v1254_v11 = vpack.c.bf16 %v443_v6, %v442_v7  ;;  %v414_v12 = vadd.f32 %v1548_v29, %v413_v10  ;;  %1139 = vmatprep.mubr.msk.f32.mxu1 %vm226_vm0, %v442_v7  ;;  %1244 = vmatprep.subr.msk.bf16.mxu0 %vm1481_vm1, %v1242_v60 }
 0x10e   : > { %v445_v13 = vmax.f32 %v419_v9, 0.0  ;;  %1275 = vmatprep.subr.msk.bf16.mxu1 %vm1481_vm1, %v1242_v60  ;;  %1140 = vmatmul.mubr.msk.f32.gmra.mrb[10].mxu1 %vm226_vm0, %v443_v6 }
 0x10f   : > { %v444_v14 = vmax.f32 %v414_v12, 0.0  ;;  %v1115_v15 = vpop.f32.mrb[14].mxu0 }
 0x110   : > { %v429_v16 = vadd.f32 %v1115_v15, %v1548_v29  ;;  %v423_v17 = vpop.f32.mrb[15].mxu0 }
 0x111   : > { %v1260_v18 = vpack.c.bf16 %v445_v13, %v444_v14  ;;  %v424_v19 = vadd.f32 %v1548_v29, %v423_v17  ;;  %1142 = vmatprep.mubr.msk.f32.mxu1 %vm226_vm0, %v444_v14 }
 0x112   : > { %v447_v20 = vmax.f32 %v429_v16, 0.0  ;;  %1143 = vmatmul.mubr.msk.f32.gmra.mrb[12].mxu1 %vm226_vm0, %v445_v13 }
 0x113   : > { %v446_v21 = vmax.f32 %v424_v19, 0.0 }
 0x114   : > { %1247 = vmatpush3.bf16.xpose.msk.msra.mxu0 %vm1481_vm1, %v1242_v60  ;;  %1283 = vmatpush3.bf16.xpose.msk.msra.mxu1 %vm1481_vm1, %v1242_v60 }
 0x115   : > { %v1266_v22 = vpack.c.bf16 %v447_v20, %v446_v21  ;;  %1145 = vmatprep.mubr.msk.f32.mxu1 %vm226_vm0, %v446_v21  ;;  %1250 = vmatprep.subr.msk.bf16.mxu0 %vm1481_vm1, %v1248_v3 }
 0x116   : > { %1276 = vmatprep.subr.msk.bf16.mxu1 %vm1481_vm1, %v1248_v3  ;;  %1146 = vmatmul.mubr.msk.f32.gmra.mrb[14].mxu1 %vm226_vm0, %v447_v20 }
 0x11c   : > { %1253 = vmatpush3.bf16.xpose.msk.msra.mxu0 %vm1481_vm1, %v1248_v3  ;;  %1284 = vmatpush3.bf16.xpose.msk.msra.mxu1 %vm1481_vm1, %v1248_v3 }
 0x11d   : > { %1256 = vmatprep.subr.msk.bf16.mxu0 %vm1481_vm1, %v1254_v11  ;;  %1277 = vmatprep.subr.msk.bf16.mxu1 %vm1481_vm1, %v1254_v11 }
 0x124   : > { %1259 = vmatpush3.bf16.xpose.msk.msra.mxu0 %vm1481_vm1, %v1254_v11  ;;  %1285 = vmatpush3.bf16.xpose.msk.msra.mxu1 %vm1481_vm1, %v1254_v11 }
 0x125   : > { %1262 = vmatprep.subr.msk.bf16.mxu0 %vm1481_vm1, %v1260_v18  ;;  %1278 = vmatprep.subr.msk.bf16.mxu1 %vm1481_vm1, %v1260_v18 }
 0x12c   : > { %1265 = vmatpush3.bf16.xpose.msk.msra.mxu0 %vm1481_vm1, %v1260_v18  ;;  %1286 = vmatpush3.bf16.xpose.msk.msra.mxu1 %vm1481_vm1, %v1260_v18 }
 0x12d   : > { %1268 = vmatprep.subr.msk.bf16.mxu0 %vm1481_vm1, %v1266_v22  ;;  %1279 = vmatprep.subr.msk.bf16.mxu1 %vm1481_vm1, %v1266_v22 }
 0x134   : > { %1271 = vmatpush3.bf16.xpose.msk.msra.mxu0 %vm1481_vm1, %v1266_v22  ;;  %1287 = vmatpush3.bf16.xpose.msk.msra.mxu1 %vm1481_vm1, %v1266_v22 }
 0x1cd   : > { %v1126_v23 = vpop.f32.mrb[0].mxu1 }
 0x1ce   : > { %v566_v24 = vpop.f32.mrb[1].mxu1 }
 0x1cf   : > { %1180 = vmatprep.mubr.msk.f32.mxu0 %vm226_vm0, %v566_v24 }
 0x1d0   : > { %1181 = vmatmul.mubr.msk.f32.vlgmr.msra.gmra.mrb[16].mxu0 %vm226_vm0, %v1126_v23 }
 0x1d1   : > { %v1129_v25 = vpop.f32.mrb[2].mxu1 }
 0x1d2   : > { %v576_v26 = vpop.f32.mrb[3].mxu1 }
 0x1d3   : > { %1183 = vmatprep.mubr.msk.f32.mxu0 %vm226_vm0, %v576_v26 }
 0x1d4   : > { %1184 = vmatmul.mubr.msk.f32.gmra.mrb[18].mxu0 %vm226_vm0, %v1129_v25 }
 0x1d5   : > { %v1132_v27 = vpop.f32.mrb[4].mxu1 }
 0x1d6   : > { %v586_v28 = vpop.f32.mrb[5].mxu1 }
 0x1d7   : > { %1186 = vmatprep.mubr.msk.f32.mxu0 %vm226_vm0, %v586_v28 }
 0x1d8   : > { %1187 = vmatmul.mubr.msk.f32.gmra.mrb[20].mxu0 %vm226_vm0, %v1132_v27 }
 0x1d9   : > { %v1135_v4 = vpop.f32.mrb[6].mxu1 }
 0x1da   : > { %v596_v29 = vpop.f32.mrb[7].mxu1 }
 0x1db   : > { %1189 = vmatprep.mubr.msk.f32.mxu1 %vm226_vm0, %v596_v29 }
 0x1dc   : > { %1190 = vmatmul.mubr.msk.f32.vlgmr.msra.gmra.mrb[16].mxu1 %vm226_vm0, %v1135_v4 }
 0x1dd   : > { %v1138_v30 = vpop.f32.mrb[8].mxu1 }
 0x1de   : > { %v606_v31 = vpop.f32.mrb[9].mxu1 }
 0x1df   : > { %1192 = vmatprep.mubr.msk.f32.mxu1 %vm226_vm0, %v606_v31 }
 0x1e0   : > { %1193 = vmatmul.mubr.msk.f32.gmra.mrb[18].mxu1 %vm226_vm0, %v1138_v30 }
 0x1e1   : > { %v1141_v32 = vpop.f32.mrb[10].mxu1 }
 0x1e2   : > { %v616_v33 = vpop.f32.mrb[11].mxu1 }
 0x1e3   : > { %1195 = vmatprep.mubr.msk.f32.mxu1 %vm226_vm0, %v616_v33 }
 0x1e4   : > { %1196 = vmatmul.mubr.msk.f32.gmra.mrb[20].mxu1 %vm226_vm0, %v1141_v32 }
 0x1e5   : > { %v1144_v34 = vpop.f32.mrb[12].mxu1 }
 0x1e6   : > { %v626_v35 = vpop.f32.mrb[13].mxu1 }
 0x1e7   : > { %1198 = vmatprep.mubr.msk.f32.mxu1 %vm226_vm0, %v626_v35 }
 0x1e8   : > { %1199 = vmatmul.mubr.msk.f32.gmra.mrb[22].mxu1 %vm226_vm0, %v1144_v34 }
 0x1e9   : > { %v1147_v36 = vpop.f32.mrb[14].mxu1 }
 0x1ea   : > { %v636_v37 = vpop.f32.mrb[15].mxu1 }
 0x1eb   : > { %1201 = vmatprep.mubr.msk.f32.mxu1 %vm226_vm0, %v636_v37 }
 0x1ec   : > { %1202 = vmatmul.mubr.msk.f32.gmra.mrb[24].mxu1 %vm226_vm0, %v1147_v36 }
 0x2a3   : > { %v1182_v38 = vpop.f32.mrb[16].mxu0 }
 0x2a4   : > { %839 = vst [vmem:[%s1665_s9 + $0x8] sm:$0xff] %v1182_v38  ;;  %v759_v39 = vpop.f32.mrb[17].mxu0 }
 0x2a5   : > { %838 = vst [vmem:[%s1665_s9] sm:$0xff] %v759_v39 }
 0x2a7   : > { %v1185_v40 = vpop.f32.mrb[18].mxu0 }
 0x2a8   : > { %841 = vst [vmem:[%s1665_s9 + $0x18] sm:$0xff] %v1185_v40  ;;  %v769_v41 = vpop.f32.mrb[19].mxu0 }
 0x2a9   : > { %840 = vst [vmem:[%s1665_s9 + $0x10] sm:$0xff] %v769_v41 }
 0x2ab   : > { %v1188_v42 = vpop.f32.mrb[20].mxu0 }
 0x2ac   : > { %843 = vst [vmem:[%s1665_s9 + $0x28] sm:$0xff] %v1188_v42  ;;  %v779_v43 = vpop.f32.mrb[21].mxu0 }
 0x2ad   : > { %842 = vst [vmem:[%s1665_s9 + $0x20] sm:$0xff] %v779_v43 }
 0x2af   : > { %v1191_v44 = vpop.f32.mrb[16].mxu1 }
 0x2b0   : > { %845 = vst [vmem:[%s1665_s9 + $0x38] sm:$0xff] %v1191_v44  ;;  %v789_v45 = vpop.f32.mrb[17].mxu1 }
 0x2b1   : > { %844 = vst [vmem:[%s1665_s9 + $0x30] sm:$0xff] %v789_v45 }
 0x2b3   : > { %v1194_v46 = vpop.f32.mrb[18].mxu1 }
 0x2b4   : > { %847 = vst [vmem:[%s1665_s9 + $0x48] sm:$0xff] %v1194_v46  ;;  %v799_v47 = vpop.f32.mrb[19].mxu1 }
 0x2b5   : > { %846 = vst [vmem:[%s1665_s9 + $0x40] sm:$0xff] %v799_v47 }
 0x2b7   : > { %v1197_v48 = vpop.f32.mrb[20].mxu1 }
 0x2b8   : > { %849 = vst [vmem:[%s1665_s9 + $0x58] sm:$0xff] %v1197_v48  ;;  %v809_v49 = vpop.f32.mrb[21].mxu1 }
 0x2b9   : > { %848 = vst [vmem:[%s1665_s9 + $0x50] sm:$0xff] %v809_v49 }
 0x2bb   : > { %v1200_v50 = vpop.f32.mrb[22].mxu1 }
 0x2bc   : > { %851 = vst [vmem:[%s1665_s9 + $0x68] sm:$0xff] %v1200_v50  ;;  %v819_v51 = vpop.f32.mrb[23].mxu1 }
 0x2bd   : > { %850 = vst [vmem:[%s1665_s9 + $0x60] sm:$0xff] %v819_v51 }
 0x2bf   : > { %v1203_v52 = vpop.f32.mrb[24].mxu1 }
 0x2c0   : > { %853 = vst [vmem:[%s1665_s9 + $0x78] sm:$0xff] %v1203_v52  ;;  %v829_v53 = vpop.f32.mrb[25].mxu1 }
 0x2c1   : > { %852 = vst [vmem:[%s1665_s9 + $0x70] sm:$0xff] %v829_v53 }
 0x2c2   : > { %1342 = shalt.err (!%p1339_p3)
}
 0x2c3   : > { %s1343_s28 = scalar_lea.hbm %s1686_s14, 2048  ;;  %s1347_s5 = scalar_lea.hbm %s1739_s4, 4096 }
 0x2c4   : > { %p1344_p4 = scmp.ne.s32.totalorder %s1686_s14, %s1343_s28  ;;  %p1348_p9 = scmp.lt.u32.totalorder %s1686_s14, %s1739_s4 }
 0x2c5   : > { %p1349_p10 = scmp.lt.u32.totalorder %s1347_s5, %s1343_s28  ;;  %p1351_p12 = scmp.lt.u32.totalorder %s1343_s28, %s1686_s14 }
 0x2c6   : > { %p1345_p7 = pnand %p1344_p4, %p1459_p5 }
 0x2c7   : > { %p1350_p11 = por %p1349_p10, %p1348_p9 }
 0x2c8   : > { %p1346_p8 = pneg %p1345_p7 }
 0x2c9   : > { %p1352_p13 = por %p1351_p12, %p1350_p11 }
 0x2cb   : > { %p1353_p0 = pnand %p1352_p13, %p1346_p8 }
 0x2cd   : > { %1356 = shalt.err (!%p1353_p0)
}
 0x2ce   : > { %s1394_s8 = smov 128   ;;  %s1395_s9 = smov 8  }
 0x2cf   : > { %1288 = dma.vmem_to_hbm [thread:$0]  (%p1459_p5), %s1688_s11, 2048, %s1686_s14, %s1694_s19, %s1394_s8, %s1394_s8, %s1395_s9  }
 0x2d0 PF: > { %p1294_p1 = scmp.ge.s32.totalorder %s1391_s18, 2  ;;  %s883_s10 = sand.u32 1, %s1379_s15  }
 0x2d1   : > { %s884_s12 = scalar_lea.sflag [#allocation3], %s883_s10 }
 0x2d2   : > { %p1291_p2 = pnand %p1294_p1, %p1463_p6 }
 0x2d4   : > { %1374 = dma.done.wait (!%p1291_p2), %s884_s12, 2048  }
 0x2d5   : > { %1376 = vsyncadd (!%p1291_p2), %s884_s12, 4294965248  ;;  %p14_p3 = scmp.ge.s32.totalorder %s1446_s21, 4   ;;  %s1744_s15 = smov %s1383_s16 }
 0x2d6   : > { %s1745_s16 = smov %s1387_s17  ;;  %s1746_s17 = smov %s1457_s24 }
 0x2d7   : > { %s1747_s18 = smov %s1446_s21  ;;  %16 = sbr.rel (!%p14_p3) target bundleno = 3 (0x3), region = 71 }
 0x2de   :  { %889 = vsyncpa [#allocation3], 1 }
 0x2df   :  { %891 = vsyncpa [#allocation3 + $0x1], 1 }

</bundles_post_ra>
